<compile_context>
chip_gen: v6e
topology: v6e:2x2x1
jax: 0.10.0
libtpu: 0.0.40
codegen_flags: <defaults>
</compile_context>

<pallas_src>
import jax
import jax.numpy as jnp
from jax.experimental import pallas as pl
from jax.experimental.pallas import tpu as pltpu

_LANES = 128            # vreg lane width (identical on v5e / v6e / v7x)
_MAX_BLOCK_ROWS = 1024  # 1024 * 128 * 4B = 512 KiB/buffer; ~2 MiB with
                        # double-buffered in + out -> huge scoped-VMEM headroom.


def _identity_kernel(x_ref, o_ref):
    # Pure pass-through (VMEM -> VMEM) of one lane-dense tile.
    o_ref[...] = x_ref[...]


def _choose_block_rows(rows):
    """Pick a tile height: prefer an exact divisor of `rows` (no padding),
    a multiple of 8 (sublane aligned), capped at _MAX_BLOCK_ROWS."""
    if rows <= _MAX_BLOCK_ROWS:
        return rows, 0  # full-extent block is always legal
    for cand in range(_MAX_BLOCK_ROWS, 7, -8):
        if rows % cand == 0:
            return cand, 0
    # Fallback: pad rows up to a multiple of the max block size.
    block = _MAX_BLOCK_ROWS
    return block, (-rows) % block


def basic_net_forward(x):
    """Identity forward matching (as closely as possible) BasicNet.forward.

    x: NCHW array. Returns an array with identical shape/dtype/values.
    """
    orig_shape = x.shape
    total = x.size

    # --- Lane-dense flattening: last dim = 128 so stores are full-width. ---
    flat = x.reshape(-1)
    lane_pad = (-total) % _LANES
    if lane_pad:
        flat = jnp.pad(flat, (0, lane_pad))
    rows = flat.size // _LANES
    x2d = flat.reshape(rows, _LANES)

    # --- Tile rows; avoid padding whenever a clean divisor exists. ---
    block_rows, row_pad = _choose_block_rows(rows)
    if row_pad:
        x2d = jnp.pad(x2d, ((0, row_pad), (0, 0)))
        rows += row_pad
    grid = (rows // block_rows,)

    bytes_moved = 2 * rows * _LANES * x2d.dtype.itemsize  # read + write

    out2d = pl.pallas_call(
        _identity_kernel,
        out_shape=jax.ShapeDtypeStruct((rows, _LANES), x2d.dtype),
        grid=grid,
        in_specs=[pl.BlockSpec((block_rows, _LANES), lambda i: (i, 0))],
        out_specs=pl.BlockSpec((block_rows, _LANES), lambda i: (i, 0)),
        # Output reuses the input HBM buffer (no second HBM allocation).
        input_output_aliases={0: 0},
        compiler_params=pltpu.CompilerParams(
            dimension_semantics=("parallel",),  # shards across both TCs on v7x
        ),
        cost_estimate=pl.CostEstimate(
            flops=0, transcendentals=0, bytes_accessed=bytes_moved),
    )(x2d)

    out_flat = out2d.reshape(-1)[:total]
    return out_flat.reshape(orig_shape)


if __name__ == "__main__":
    key = jax.random.PRNGKey(0)
    # Small NCHW input consistent with a conv-style module: batch=2, nc_in=4, 16x16.
    x = jax.random.normal(key, (2, 4, 16, 16), dtype=jnp.float32)

    forward = jax.jit(basic_net_forward)
    y = forward(x)
    jax.block_until_ready(y)

    # Sanity check: identity semantics.
    assert y.shape == x.shape and y.dtype == x.dtype
    assert bool(jnp.allclose(y, x))

    print("KERNEL_OK")
</pallas_src>

<mosaic_0001>
module attributes {stable_mosaic.version = 11 : i64} {
  func.func @_identity_kernel(%arg0: i32, %arg1: memref<16x128xf32, #tpu.memory_space<vmem>>, %arg2: memref<16x128xf32, #tpu.memory_space<vmem>>) attributes {dimension_semantics = [#tpu.dimension_semantics<parallel>], iteration_bounds = array<i64: 1>, scalar_prefetch = 0 : i64, scratch_operands = 0 : i64, tpu.core_type = #tpu.core_type<tc>, window_params = [{transform_indices = @transform_0, window_bounds = array<i64: 16, 128>}, {transform_indices = @transform_1, window_bounds = array<i64: 16, 128>}]} {
    %c0 = arith.constant 0 : index
    %c0_0 = arith.constant 0 : index
    %0 = vector.load %arg1[%c0, %c0_0] : memref<16x128xf32, #tpu.memory_space<vmem>>, vector<16x128xf32>
    %c0_1 = arith.constant 0 : index
    %c0_2 = arith.constant 0 : index
    %1 = vector.load %arg2[%c0_1, %c0_2] : memref<16x128xf32, #tpu.memory_space<vmem>>, vector<16x128xf32>
    tpu.vector_store %arg2[%c0_1, %c0_2], %0 {strides = array<i32>} : memref<16x128xf32, #tpu.memory_space<vmem>>, vector<16x128xf32>,
    return
  }
  func.func @transform_0(%arg0: i32) -> (i32, i32) {
    %c0_i32 = arith.constant 0 : i32
    %c0_i32_0 = arith.constant 0 : i32
    return %arg0, %c0_i32 : i32, i32
  }
  func.func @transform_1(%arg0: i32) -> (i32, i32) {
    %c0_i32 = arith.constant 0 : i32
    %c0_i32_0 = arith.constant 0 : i32
    return %arg0, %c0_i32 : i32, i32
  }
}

</mosaic_0001>

<bundles_post_ra>
// kernel: basic_net_forward.1
= control target key start
LH: loop header
LB: loop body
LE: loop exit
PB: predicated region body
PF: predicated region fallthrough
CT: control target
= control target key end

     0   :  { %s38_s0 = inlined_call_operand.vmem [shape: f32[16,128], index: 0, kind: input, shape index: {}, may-alias: {0,1}]   ;;  %s39_s1 = inlined_call_operand.vmem [shape: f32[16,128], index: 1, kind: output, shape index: {}, may-alias: {0,1}]  }
   0x1   :  { %v8_v0 = vld [vmem:[%s38_s0] sm:$0xff]  ;;  %v9_v1 = vld [vmem:[%s38_s0 + $0x8] sm:$0xff] }
   0x2   :  { %10 = vst [vmem:[%s39_s1] sm:$0xff] %v8_v0  ;;  %11 = vst [vmem:[%s39_s1 + $0x8] sm:$0xff] %v9_v1 }

</bundles_post_ra>
